<compile_context>
chip_gen: v7x
topology: tpu7x:2x2x1
jax: 0.10.0
libtpu: 0.0.40
codegen_flags: <defaults>
</compile_context>

<pallas_src>
import jax
import jax.numpy as jnp
from jax.experimental import pallas as pl
from jax.experimental.pallas import tpu as pltpu


def _round_up(x, m):
    return ((x + m - 1) // m) * m


def _qnetwork_kernel(state_ref, w1_ref, b1_ref, w2_ref, b2_ref, w3_ref, b3_ref,
                     out_ref):
    """Fused MLP: (B,S) -> (B,F1) -> (B,F2) -> (B,A), all in VMEM.

    Matmuls run at the weights' dtype (f32, or bf16 if params were pre-cast)
    with f32 accumulation; bias-add and ReLU are always f32.
    """

    def mm(a, w_ref):
        # Cast LHS to the weight dtype on-chip (free VPU slot); f32 MXU accum.
        return jnp.dot(a.astype(w_ref.dtype), w_ref[...],
                       preferred_element_type=jnp.float32)

    h1 = jnp.maximum(mm(state_ref[...], w1_ref) + b1_ref[...], 0.0)  # (B, F1)
    h2 = jnp.maximum(mm(h1, w2_ref) + b2_ref[...], 0.0)             # (B, F2)
    out_ref[...] = (mm(h2, w3_ref) + b3_ref[...]).astype(out_ref.dtype)


def qnetwork_forward(state, params, *, tile_b=4096, single_block_max=256):
    """Run the fused QNetwork kernel.

    state:  (batch, state_size) float32
    params: dict with kernel-ready arrays (weights transposed to (in, out)):
            w1 (S,F1), b1 (1,F1), w2 (F1,F2), b2 (1,F2), w3 (F2,A), b3 (1,A)

    Small batches (<= single_block_max): grid-less single-block call, every
    operand a full-array VMEM block. Larger batches: grid over the batch axis
    only, with at least 2 steps so v7x megacore sharding is effective; weights
    use constant index_maps so they stay VMEM-resident across steps.
    """
    state = jnp.asarray(state, jnp.float32)
    batch, state_size = state.shape

    w1, b1 = params["w1"], params["b1"]
    w2, b2 = params["w2"], params["b2"]
    w3, b3 = params["w3"], params["b3"]
    action_size = w3.shape[1]
    f1, f2 = w1.shape[1], w2.shape[1]

    flops = 2 * batch * (state_size * f1 + f1 * f2 + f2 * action_size)
    weights = (w1, b1, w2, b2, w3, b3)
    bytes_accessed = (state.size * state.dtype.itemsize
                      + sum(int(a.size) * a.dtype.itemsize for a in weights)
                      + batch * action_size * 4)
    cost = pl.CostEstimate(flops=flops, transcendentals=0,
                           bytes_accessed=bytes_accessed)

    inputs = (state, w1, b1, w2, b2, w3, b3)

    if batch <= single_block_max:
        # --- Single-block path (act/eval): no grid, no pipelining overhead. ---
        return pl.pallas_call(
            _qnetwork_kernel,
            out_shape=jax.ShapeDtypeStruct((batch, action_size), jnp.float32),
            in_specs=[pl.BlockSpec(memory_space=pltpu.MemorySpace.VMEM)
                      for _ in inputs],
            out_specs=pl.BlockSpec(memory_space=pltpu.MemorySpace.VMEM),
            cost_estimate=cost,
        )(*inputs)

    # --- Batch-gridded path (replay/training). ---
    # Cap tile_b so there are always >= 2 grid steps (v7x: both TensorCores).
    tb = min(tile_b, _round_up(pl.cdiv(batch, 2), 8))
    tb = max(tb, 8)
    num_tiles = pl.cdiv(batch, tb)  # ragged last tile handled by Pallas

    in_specs = [pl.BlockSpec((tb, state_size), lambda i: (i, 0))]
    # Weights/biases: full-array blocks, constant index_map => VMEM-resident.
    in_specs += [pl.BlockSpec(a.shape, lambda i: (0, 0)) for a in inputs[1:]]
    out_spec = pl.BlockSpec((tb, action_size), lambda i: (i, 0))

    return pl.pallas_call(
        _qnetwork_kernel,
        out_shape=jax.ShapeDtypeStruct((batch, action_size), jnp.float32),
        grid=(num_tiles,),
        in_specs=in_specs,
        out_specs=out_spec,
        compiler_params=pltpu.CompilerParams(
            dimension_semantics=("parallel",)),
        cost_estimate=cost,
    )(*inputs)


def cast_params_bf16(params):
    """Optional one-time (hoisted) bf16 cast of the weight matrices.

    Deprioritized per review (kernel is DMA/overhead bound); biases stay f32,
    matmuls still accumulate in f32 inside the kernel.
    """
    out = dict(params)
    for k in ("w1", "w2", "w3"):
        out[k] = params[k].astype(jnp.bfloat16)
    return out


def init_qnetwork_params(key, state_size, action_size,
                         fc1_units=64, fc2_units=64, leak=0.01):
    """Init matching the PyTorch module's reset_parameters() distributions.

    fc1/fc2: kaiming_normal (fan_in, leaky_relu gain with a=leak)
    fc3    : uniform(-3e-4, 3e-4)
    biases : PyTorch Linear default uniform(-1/sqrt(fan_in), 1/sqrt(fan_in))
    Weights are returned transposed to (in, out), kernel-ready (no per-call prep).
    """
    k1, k2, k3, kb1, kb2, kb3 = jax.random.split(key, 6)

    def kaiming_normal(k, fan_in, fan_out):
        gain = jnp.sqrt(2.0 / (1.0 + leak ** 2))
        std = gain / jnp.sqrt(fan_in)
        return std * jax.random.normal(k, (fan_in, fan_out), dtype=jnp.float32)

    def bias_uniform(k, fan_in, fan_out):
        bound = 1.0 / jnp.sqrt(fan_in)
        return jax.random.uniform(k, (1, fan_out), dtype=jnp.float32,
                                  minval=-bound, maxval=bound)

    return {
        "w1": kaiming_normal(k1, state_size, fc1_units),
        "b1": bias_uniform(kb1, state_size, fc1_units),
        "w2": kaiming_normal(k2, fc1_units, fc2_units),
        "b2": bias_uniform(kb2, fc1_units, fc2_units),
        "w3": jax.random.uniform(k3, (fc2_units, action_size),
                                 dtype=jnp.float32,
                                 minval=-0.0003, maxval=0.0003),
        "b3": bias_uniform(kb3, fc2_units, action_size),
    }


def qnetwork_ref(state, params):
    """Pure-JAX reference for correctness check."""
    h1 = jnp.maximum(state @ params["w1"].astype(jnp.float32) + params["b1"], 0.0)
    h2 = jnp.maximum(h1 @ params["w2"].astype(jnp.float32) + params["b2"], 0.0)
    return h2 @ params["w3"].astype(jnp.float32) + params["b3"]


if __name__ == "__main__":
    state_size = 16
    action_size = 4
    fc1_units = fc2_units = 64

    key = jax.random.PRNGKey(0)
    k_state, k_params, k_big = jax.random.split(key, 3)
    params = init_qnetwork_params(k_params, state_size, action_size,
                                  fc1_units, fc2_units)

    # --- Small-batch (act/eval) path: single block, no grid. ---
    state_small = jax.random.normal(k_state, (8, state_size), dtype=jnp.float32)
    out_small = jax.block_until_ready(qnetwork_forward(state_small, params))
    ref_small = qnetwork_ref(state_small, params)
    assert out_small.shape == (8, action_size)
    assert jnp.allclose(out_small, ref_small, atol=1e-5, rtol=1e-5), \
        "small-batch mismatch vs reference"

    # --- Batch-gridded (replay) path: non-multiple batch, ragged last tile,
    #     >=2 grid steps, weights VMEM-resident. ---
    state_big = jax.random.normal(k_big, (300, state_size), dtype=jnp.float32)
    out_big = jax.block_until_ready(
        qnetwork_forward(state_big, params, tile_b=128, single_block_max=64))
    ref_big = qnetwork_ref(state_big, params)
    assert out_big.shape == (300, action_size)
    assert jnp.allclose(out_big, ref_big, atol=1e-5, rtol=1e-5), \
        "batch-gridded mismatch vs reference"

    # --- Optional bf16-weight path (one-time hoisted cast): looser tolerance. ---
    params_bf16 = cast_params_bf16(params)
    out_bf16 = jax.block_until_ready(
        qnetwork_forward(state_big, params_bf16, tile_b=128, single_block_max=64))
    assert jnp.allclose(out_bf16, ref_big, atol=2e-2, rtol=2e-2), \
        "bf16-weight path mismatch vs reference"

    print("KERNEL_OK")
</pallas_src>

<mosaic_0001>
module attributes {stable_mosaic.version = 11 : i64} {
  func.func @_qnetwork_kernel(%arg0: memref<8x16xf32, #tpu.memory_space<vmem>>, %arg1: memref<16x64xf32, #tpu.memory_space<vmem>>, %arg2: memref<1x64xf32, #tpu.memory_space<vmem>>, %arg3: memref<64x64xf32, #tpu.memory_space<vmem>>, %arg4: memref<1x64xf32, #tpu.memory_space<vmem>>, %arg5: memref<64x4xf32, #tpu.memory_space<vmem>>, %arg6: memref<1x4xf32, #tpu.memory_space<vmem>>, %arg7: memref<8x4xf32, #tpu.memory_space<vmem>>) attributes {dimension_semantics = [], scalar_prefetch = 0 : i64, scratch_operands = 0 : i64, tpu.core_type = #tpu.core_type<tc>} {
    %c0 = arith.constant 0 : index
    %c0_0 = arith.constant 0 : index
    %0 = vector.load %arg0[%c0, %c0_0] : memref<8x16xf32, #tpu.memory_space<vmem>>, vector<8x16xf32>
    %c0_1 = arith.constant 0 : index
    %c0_2 = arith.constant 0 : index
    %1 = vector.load %arg1[%c0_1, %c0_2] : memref<16x64xf32, #tpu.memory_space<vmem>>, vector<16x64xf32>
    %cst = arith.constant dense<0.000000e+00> : vector<8x64xf32>
    %2 = tpu.matmul %0, %1, %cst {dimension_numbers = #tpu.dot_dimension_numbers<[1], [0], [0], [1], [0, 0, 1, 1], [], []>} : vector<8x16xf32>, vector<16x64xf32>, vector<8x64xf32> -> vector<8x64xf32>
    %c0_3 = arith.constant 0 : index
    %c0_4 = arith.constant 0 : index
    %3 = vector.load %arg2[%c0_3, %c0_4] : memref<1x64xf32, #tpu.memory_space<vmem>>, vector<1x64xf32>
    %4 = vector.broadcast %3 : vector<1x64xf32> to vector<8x64xf32>
    %5 = arith.addf %2, %4 : vector<8x64xf32>
    %cst_5 = arith.constant 0.000000e+00 : f32
    %6 = vector.broadcast %cst_5 : f32 to vector<8x64xf32>
    %7 = arith.maximumf %5, %6 : vector<8x64xf32>
    %c0_6 = arith.constant 0 : index
    %c0_7 = arith.constant 0 : index
    %8 = vector.load %arg3[%c0_6, %c0_7] : memref<64x64xf32, #tpu.memory_space<vmem>>, vector<64x64xf32>
    %cst_8 = arith.constant dense<0.000000e+00> : vector<8x64xf32>
    %9 = tpu.matmul %7, %8, %cst_8 {dimension_numbers = #tpu.dot_dimension_numbers<[1], [0], [0], [1], [0, 0, 1, 1], [], []>} : vector<8x64xf32>, vector<64x64xf32>, vector<8x64xf32> -> vector<8x64xf32>
    %c0_9 = arith.constant 0 : index
    %c0_10 = arith.constant 0 : index
    %10 = vector.load %arg4[%c0_9, %c0_10] : memref<1x64xf32, #tpu.memory_space<vmem>>, vector<1x64xf32>
    %11 = vector.broadcast %10 : vector<1x64xf32> to vector<8x64xf32>
    %12 = arith.addf %9, %11 : vector<8x64xf32>
    %cst_11 = arith.constant 0.000000e+00 : f32
    %13 = vector.broadcast %cst_11 : f32 to vector<8x64xf32>
    %14 = arith.maximumf %12, %13 : vector<8x64xf32>
    %c0_12 = arith.constant 0 : index
    %c0_13 = arith.constant 0 : index
    %15 = vector.load %arg5[%c0_12, %c0_13] : memref<64x4xf32, #tpu.memory_space<vmem>>, vector<64x4xf32>
    %cst_14 = arith.constant dense<0.000000e+00> : vector<8x4xf32>
    %16 = tpu.matmul %14, %15, %cst_14 {dimension_numbers = #tpu.dot_dimension_numbers<[1], [0], [0], [1], [0, 0, 1, 1], [], []>} : vector<8x64xf32>, vector<64x4xf32>, vector<8x4xf32> -> vector<8x4xf32>
    %c0_15 = arith.constant 0 : index
    %c0_16 = arith.constant 0 : index
    %17 = vector.load %arg6[%c0_15, %c0_16] : memref<1x4xf32, #tpu.memory_space<vmem>>, vector<1x4xf32>
    %18 = vector.broadcast %17 : vector<1x4xf32> to vector<8x4xf32>
    %19 = arith.addf %16, %18 : vector<8x4xf32>
    %c0_17 = arith.constant 0 : index
    %c0_18 = arith.constant 0 : index
    %20 = vector.load %arg7[%c0_17, %c0_18] : memref<8x4xf32, #tpu.memory_space<vmem>>, vector<8x4xf32>
    tpu.vector_store %arg7[%c0_17, %c0_18], %19 {strides = array<i32>} : memref<8x4xf32, #tpu.memory_space<vmem>>, vector<8x4xf32>,
    return
  }
}

</mosaic_0001>

<bundles_post_ra>
// kernel: tpu_custom_call.1
= control target key start
LH: loop header
LB: loop body
LE: loop exit
PB: predicated region body
PF: predicated region fallthrough
CT: control target
= control target key end

     0   :  { %12 = vsyncpa [#allocation3], 0  ;;  %s439_s24 = smov [#allocation2]   ;;  %s563_s0 = inlined_call_operand.vmem [shape: f32[8,16], index: 0, kind: input, shape index: {}]   ;;  %s564_s1 = inlined_call_operand.hbm [shape: f32[16,64], index: 1, kind: input, shape index: {}]   ;;  %s565_s2 = inlined_call_operand.vmem [shape: f32[1,64], index: 2, kind: input, shape index: {}]   ;;  %s566_s3 = inlined_call_operand.vmem [shape: f32[64,64], index: 3, kind: input, shape index: {}]   ;;  %s567_s4 = inlined_call_operand.vmem [shape: f32[1,64], index: 4, kind: input, shape index: {}]   ;;  %s568_s5 = inlined_call_operand.vmem [shape: f32[64,4], index: 5, kind: input, shape index: {}]   ;;  %s569_s6 = inlined_call_operand.vmem [shape: f32[1,4], index: 6, kind: input, shape index: {}]   ;;  %s570_s7 = inlined_call_operand.vmem [shape: f32[8,4], index: 7, kind: output, shape index: {}]  }
   0x1   :  { %s20_s25 = sshll.u32 %s439_s24, 4  ;;  %s415_s28 = scalar_lea.hbm %s564_s1, 256  ;;  %s21_s25 = int_to_ptr.vmem [resolvable:$true] %s20_s25 }
   0x2   :  { %p416_p0 = scmp.ne.s32.totalorder %s564_s1, %s415_s28  ;;  %p419_p1 = scmp.lt.u32.totalorder %s415_s28, %s564_s1 }
   0x4   :  { %p421_p2 = pnand %p419_p1, %p416_p0 }
   0x6   :  { %424 = shalt.err (!%p421_p2)
}
   0x7   :  { %s425_s10 = scalar_lea.vmem %s21_s25, 256  ;;  %p430_p4 = scmp.lt.s32.totalorder %s21_s25, %s21_s25 }
   0x8   :  { %p426_p3 = scmp.ne.s32.totalorder %s21_s25, %s425_s10  ;;  %p431_p5 = scmp.lt.s32.totalorder %s425_s10, %s425_s10 }
   0xa   :  { %p432_p6 = por %p431_p5, %p430_p4 }
   0xc   :  { %p433_p7 = pnand %p432_p6, %p426_p3 }
   0xe   :  { %436 = shalt.err (!%p433_p7)
}
   0xf   :  { %s440_s11 = smov 128   ;;  %s441_s12 = smov 8  }
  0x10   :  { %26 = dma.hbm_to_vmem [thread:$0]  %s564_s1, 256, %s21_s25, [#allocation3], %s440_s11, %s440_s11, %s441_s12  }
  0x11   :  { %437 = dma.done.wait [#allocation3], 256  }
  0x12   :  { %438 = vsyncadd [#allocation3], 4294967040  ;;  %v442_v0 = vmov 0.0|0.0   ;;  %vm443_vm0 = vmmov 0   ;;  %v444_v1 = vmov 0.0   ;;  %v41_v2 = vld [vmem:[#allocation2] sm:$0xff] }
  0x13   :  { %382 = vmatprep.subr.bf16.mxu0 %v442_v0  ;;  %341 = vmatprep.mubr.msk.f32.mxu0 %vm443_vm0, %v444_v1  ;;  %v42_v3 = vld [vmem:[#allocation2 + $0x8] sm:$0xff]  ;;  %v125_v5 = vld [vmem:[%s566_s3] sm:$0xff]  ;;  %v127_v7 = vld [vmem:[%s566_s3 + $0x10] sm:$0xff]  ;;  %vm50_vm1 = vcmask 130048   ;;  %vm140_vm2 = vcmask 523264   ;;  %vm303_vm3 = vcmask 31744  }
  0x14   :  { %385 = vmatprep.subr.bf16.mxu1 %v442_v0  ;;  %360 = vmatprep.mubr.msk.f32.mxu1 %vm443_vm0, %v444_v1  ;;  %v383_v4 = vpack.c.bf16 %v42_v3, %v41_v2  ;;  %v126_v6 = vld [vmem:[%s566_s3 + $0x8] sm:$0xff]  ;;  %v128_v9 = vld [vmem:[%s566_s3 + $0x18] sm:$0xff]  ;;  %v40_v10 = vld [vmem:[%s563_s0] sm:$0xff] }
  0x15   :  { %v386_v8 = vpack.c.bf16 %v126_v6, %v125_v5  ;;  %v389_v11 = vpack.c.bf16 %v128_v9, %v127_v7  ;;  %v129_v12 = vld [vmem:[%s566_s3 + $0x20] sm:$0xff]  ;;  %v130_v13 = vld [vmem:[%s566_s3 + $0x28] sm:$0xff]  ;;  %v131_v15 = vld [vmem:[%s566_s3 + $0x30] sm:$0xff] }
  0x16   :  { %384 = vmatpush3.bf16.msra.mxu0 %v383_v4  ;;  %v392_v14 = vpack.c.bf16 %v130_v13, %v129_v12  ;;  %v132_v16 = vld [vmem:[%s566_s3 + $0x38] sm:$0xff]  ;;  %v215_v18 = vld [vmem:[%s568_s5] sm:$0xff]  ;;  %v216_v19 = vld [vmem:[%s568_s5 + $0x8] sm:$0xff] }
  0x17   :  { %387 = vmatpush3.bf16.msra.mxu1 %v386_v8  ;;  %397 = vmatprep.subr.bf16.mxu0 %v442_v0  ;;  %v395_v17 = vpack.c.bf16 %v132_v16, %v131_v15  ;;  %v217_v20 = vld [vmem:[%s568_s5 + $0x10] sm:$0xff]  ;;  %v398_v21 = vpack.c.bf16 %v216_v19, %v215_v18  ;;  %v218_v22 = vld [vmem:[%s568_s5 + $0x18] sm:$0xff]  ;;  %v219_v24 = vld [vmem:[%s568_s5 + $0x20] sm:$0xff] }
  0x18   :  { %388 = vmatprep.subr.bf16.mxu1 %v442_v0  ;;  %v401_v23 = vpack.c.bf16 %v218_v22, %v217_v20  ;;  %v220_v25 = vld [vmem:[%s568_s5 + $0x28] sm:$0xff]  ;;  %v310_v27 = vld [vmem:[%s565_s2] ss:$0 sm:$0xff]  ;;  %v221_v32 = vld [vmem:[%s568_s5 + $0x30] sm:$0xff] }
  0x19   :  { %342 = vmatmul.mubr.msk.f32.vlgmr.msra.gmra.mrb[0].mxu0 %vm50_vm1, %v40_v10  ;;  %v404_v26 = vpack.c.bf16 %v220_v25, %v219_v24  ;;  %v222_v33 = vld [vmem:[%s568_s5 + $0x38] sm:$0xff]  ;;  %v312_v35 = vld [vmem:[%s567_s4] ss:$0 sm:$0xff] }
  0x1a   :  { %379 = vmatprep.mubr.msk.f32.mxu0 %vm443_vm0, %v444_v1  ;;  %399 = vmatpush3.bf16.msra.mxu0 %v398_v21  ;;  %v407_v34 = vpack.c.bf16 %v222_v33, %v221_v32  ;;  %v314_v40 = vld [vmem:[%s569_s6] ss:$0 sm:$0xff] }
  0x1b   :  { %390 = vmatpush3.bf16.msra.mxu1 %v389_v11  ;;  %400 = vmatprep.subr.bf16.mxu0 %v442_v0 }
  0x1c   :  { %391 = vmatprep.subr.bf16.mxu1 %v442_v0 }
  0x1e   :  { %402 = vmatpush3.bf16.msra.mxu0 %v401_v23 }
  0x1f   :  { %393 = vmatpush3.bf16.msra.mxu1 %v392_v14  ;;  %403 = vmatprep.subr.bf16.mxu0 %v442_v0 }
  0x20   :  { %394 = vmatprep.subr.bf16.mxu1 %v442_v0 }
  0x22   :  { %405 = vmatpush3.bf16.msra.mxu0 %v404_v26 }
  0x23   :  { %396 = vmatpush3.bf16.msra.mxu1 %v395_v17  ;;  %406 = vmatprep.subr.bf16.mxu0 %v442_v0 }
  0x26   :  { %408 = vmatpush3.bf16.msra.mxu0 %v407_v34 }
  0xec   :  { %v120_v28 = vpop.f32.mrb[0].mxu0 }
  0xed   :  { %v121_v29 = vadd.f32 %v310_v27, %v120_v28  ;;  %v343_v30 = vpop.f32.mrb[1].mxu0 }
  0xef   :  { %v124_v31 = vmax.f32 %v121_v29, 0.0 }
  0xf1   :  { %361 = vmatmul.mubr.msk.f32.vlgmr.msra.gmra.mrb[0].mxu1 %vm140_vm2, %v124_v31 }
 0x1c4   :  { %v210_v36 = vpop.f32.mrb[0].mxu1 }
 0x1c5   :  { %v211_v37 = vadd.f32 %v312_v35, %v210_v36  ;;  %v362_v38 = vpop.f32.mrb[1].mxu1 }
 0x1c7   :  { %v214_v39 = vmax.f32 %v211_v37, 0.0 }
 0x1c9   :  { %380 = vmatmul.mubr.msk.f32.vlgmr.msra.gmra.mrb[2].mxu0 %vm140_vm2, %v214_v39 }
 0x29c   :  { %v299_v41 = vpop.f32.mrb[2].mxu0 }
 0x29d   :  { %v300_v42 = vadd.f32 %v314_v40, %v299_v41  ;;  %v381_v43 = vpop.f32.mrb[3].mxu0 }
 0x29f   :  { %304 = vst.msk [vmem:[%s570_s7] sm:$0xff] %vm303_vm3, %v300_v42 }
 0x2a0   :  { %309 = vsyncpa [#allocation3], 1 }

</bundles_post_ra>
